<compile_context>
chip_gen: v6e
topology: v6e:2x2x1
jax: 0.10.0
libtpu: 0.0.40
codegen_flags: <defaults>
</compile_context>

<pallas_src>
import functools
import math

import jax
import jax.numpy as jnp
from jax.experimental import pallas as pl
from jax.experimental.pallas import tpu as pltpu

_LANES = 512                      # lane-dense last dim, multiple of 128
_TARGET_BLOCK_BYTES = 4 << 20     # ~4 MiB per input block


def _generator_loss_kernel(adv_ref, out_img_ref, tgt_img_ref, o_ref, *, inv_numel):
    i = pl.program_id(0)

    @pl.when(i == 0)
    def _init():
        o_ref[0, 0] = 0.0

    # Cast to f32 in-kernel (free VPU op); accumulate per-tile SUM of sq. err.
    diff = out_img_ref[...].astype(jnp.float32) - tgt_img_ref[...].astype(jnp.float32)
    o_ref[0, 0] += jnp.sum(diff * diff)

    @pl.when(i == pl.num_programs(0) - 1)
    def _finalize():
        o_ref[0, 0] = o_ref[0, 0] * inv_numel + 0.001 * adv_ref[0, 0]


def generator_loss(out_labels, out_images, target_images):
    """JAX/Pallas equivalent of GeneratorLoss.forward.

    out_labels:    discriminator outputs, any shape (e.g. (B,) or (B, 1))
    out_images:    NCHW tensor (any float dtype)
    target_images: NCHW tensor, same shape/dtype as out_images
    """
    assert out_images.shape == target_images.shape

    numel = math.prod(out_images.shape)
    itemsize = out_images.dtype.itemsize

    # Adversarial term: O(B) work, compute with plain jnp and hand the scalar
    # to the kernel via SMEM.
    adv = jnp.mean(1.0 - out_labels.astype(jnp.float32)).reshape(1, 1)

    # Lane-dense view + tiling.
    lanes = _LANES
    rows_needed = -(-numel // lanes)
    max_tile_r = max(8, (_TARGET_BLOCK_BYTES // (lanes * itemsize)) // 8 * 8)
    if rows_needed <= max_tile_r:
        tile_r = rows_needed            # single block == full array (no (8,128) issue)
    else:
        tile_r = max_tile_r             # multiple of 8
    rows_padded = -(-rows_needed // tile_r) * tile_r
    pad = rows_padded * lanes - numel

    flat_out = out_images.reshape(-1)
    flat_tgt = target_images.reshape(-1)
    if pad:
        # Zero-pad BOTH images: pad region has diff == 0, so the sum is exact.
        flat_out = jnp.pad(flat_out, (0, pad))
        flat_tgt = jnp.pad(flat_tgt, (0, pad))
    out_2d = flat_out.reshape(rows_padded, lanes)
    tgt_2d = flat_tgt.reshape(rows_padded, lanes)

    grid = (rows_padded // tile_r,)
    kernel = functools.partial(_generator_loss_kernel, inv_numel=1.0 / numel)

    bytes_accessed = 2 * numel * itemsize + out_labels.size * out_labels.dtype.itemsize + 4
    cost = pl.CostEstimate(flops=3 * numel, transcendentals=0,
                           bytes_accessed=int(bytes_accessed))

    result = pl.pallas_call(
        kernel,
        out_shape=jax.ShapeDtypeStruct((1, 1), jnp.float32),
        grid=grid,
        in_specs=[
            pl.BlockSpec(memory_space=pltpu.SMEM),            # adversarial scalar
            pl.BlockSpec((tile_r, lanes), lambda i: (i, 0)),  # generated images
            pl.BlockSpec((tile_r, lanes), lambda i: (i, 0)),  # target images
        ],
        out_specs=pl.BlockSpec(memory_space=pltpu.SMEM),
        compiler_params=pltpu.CompilerParams(
            dimension_semantics=("arbitrary",),
            vmem_limit_bytes=48 * 1024 * 1024,
        ),
        cost_estimate=cost,
    )(adv, out_2d, tgt_2d)
    return result[0, 0]


def _reference(out_labels, out_images, target_images):
    adv = jnp.mean(1.0 - out_labels.astype(jnp.float32))
    mse = jnp.mean(
        (out_images.astype(jnp.float32) - target_images.astype(jnp.float32)) ** 2
    )
    return mse + 0.001 * adv


if __name__ == "__main__":
    key = jax.random.PRNGKey(0)
    k1, k2, k3 = jax.random.split(key, 3)

    B, C, H, W = 2, 4, 16, 16
    out_labels = jax.random.uniform(k1, (B, 1), dtype=jnp.float32)       # D(G(z)) in [0,1)
    out_images = jax.random.normal(k2, (B, C, H, W), dtype=jnp.float32)  # generated
    target_images = jax.random.normal(k3, (B, C, H, W), dtype=jnp.float32)

    loss = generator_loss(out_labels, out_images, target_images)
    loss = jax.block_until_ready(loss)

    ref = _reference(out_labels, out_images, target_images)
    assert jnp.allclose(loss, ref, rtol=1e-5, atol=1e-6), (loss, ref)

    print("KERNEL_OK")
</pallas_src>

<mosaic_0001>
module attributes {stable_mosaic.version = 11 : i64} {
  func.func @_generator_loss_kernel(%arg0: i32, %arg1: memref<1x1xf32, #tpu.memory_space<smem>>, %arg2: memref<4x512xf32, #tpu.memory_space<vmem>>, %arg3: memref<4x512xf32, #tpu.memory_space<vmem>>, %arg4: memref<1x1xf32, #tpu.memory_space<smem>>) attributes {dimension_semantics = [#tpu.dimension_semantics<arbitrary>], iteration_bounds = array<i64: 1>, scalar_prefetch = 0 : i64, scratch_operands = 0 : i64, tpu.core_type = #tpu.core_type<tc>, window_params = [{transform_indices = @transform_0, window_bounds = array<i64: 1, 1>}, {transform_indices = @transform_1, window_bounds = array<i64: 4, 512>}, {transform_indices = @transform_2, window_bounds = array<i64: 4, 512>}, {transform_indices = @transform_3, window_bounds = array<i64: 1, 1>}]} {
    %c0_i32 = arith.constant 0 : i32
    %0 = arith.cmpi eq, %arg0, %c0_i32 : i32
    %1 = arith.extui %0 : i1 to i32
    %c0_i32_0 = arith.constant 0 : i32
    %2 = arith.cmpi ne, %1, %c0_i32_0 : i32
    scf.if %2 {
      %cst_10 = arith.constant 0.000000e+00 : f32
      %c0_11 = arith.constant 0 : index
      %c0_12 = arith.constant 0 : index
      %17 = memref.load %arg4[%c0_11, %c0_12] : memref<1x1xf32, #tpu.memory_space<smem>>
      memref.store %cst_10, %arg4[%c0_11, %c0_12] : memref<1x1xf32, #tpu.memory_space<smem>>
    } else {
    }
    %c0 = arith.constant 0 : index
    %c0_1 = arith.constant 0 : index
    %3 = vector.load %arg2[%c0, %c0_1] : memref<4x512xf32, #tpu.memory_space<vmem>>, vector<4x512xf32>
    %c0_2 = arith.constant 0 : index
    %c0_3 = arith.constant 0 : index
    %4 = vector.load %arg3[%c0_2, %c0_3] : memref<4x512xf32, #tpu.memory_space<vmem>>, vector<4x512xf32>
    %5 = arith.subf %3, %4 : vector<4x512xf32>
    %c0_4 = arith.constant 0 : index
    %c0_5 = arith.constant 0 : index
    %6 = memref.load %arg4[%c0_4, %c0_5] : memref<1x1xf32, #tpu.memory_space<smem>>
    %7 = arith.mulf %5, %5 : vector<4x512xf32>
    %8 = vector.shape_cast %7 : vector<4x512xf32> to vector<1x4x512xf32>
    %cst = arith.constant dense<0.000000e+00> : vector<1xf32>
    %9 = vector.multi_reduction <add>, %8, %cst [1, 2] : vector<1x4x512xf32> to vector<1xf32>
    %10 = vector.shape_cast %9 : vector<1xf32> to vector<1x1x1xf32>
    %11 = vector.extract %10[0, 0, 0] : f32 from vector<1x1x1xf32>
    %12 = arith.addf %6, %11 : f32
    %c0_6 = arith.constant 0 : index
    %c0_7 = arith.constant 0 : index
    %13 = memref.load %arg4[%c0_6, %c0_7] : memref<1x1xf32, #tpu.memory_space<smem>>
    memref.store %12, %arg4[%c0_6, %c0_7] : memref<1x1xf32, #tpu.memory_space<smem>>
    %c0_i32_8 = arith.constant 0 : i32
    %14 = arith.cmpi eq, %arg0, %c0_i32_8 : i32
    %15 = arith.extui %14 : i1 to i32
    %c0_i32_9 = arith.constant 0 : i32
    %16 = arith.cmpi ne, %15, %c0_i32_9 : i32
    scf.if %16 {
      %c0_10 = arith.constant 0 : index
      %c0_11 = arith.constant 0 : index
      %17 = memref.load %arg4[%c0_10, %c0_11] : memref<1x1xf32, #tpu.memory_space<smem>>
      %cst_12 = arith.constant 4.8828125E-4 : f32
      %18 = arith.mulf %17, %cst_12 : f32
      %c0_13 = arith.constant 0 : index
      %c0_14 = arith.constant 0 : index
      %19 = memref.load %arg1[%c0_13, %c0_14] : memref<1x1xf32, #tpu.memory_space<smem>>
      %cst_15 = arith.constant 1.000000e-03 : f32
      %20 = arith.mulf %cst_15, %19 : f32
      %21 = arith.addf %18, %20 : f32
      %c0_16 = arith.constant 0 : index
      %c0_17 = arith.constant 0 : index
      %22 = memref.load %arg4[%c0_16, %c0_17] : memref<1x1xf32, #tpu.memory_space<smem>>
      memref.store %21, %arg4[%c0_16, %c0_17] : memref<1x1xf32, #tpu.memory_space<smem>>
    } else {
    }
    return
  }
  func.func @transform_0(%arg0: i32) -> (i32, i32) {
    %c0_i32 = arith.constant 0 : i32
    %c0_i32_0 = arith.constant 0 : i32
    %c0_i32_1 = arith.constant 0 : i32
    return %c0_i32, %c0_i32_0 : i32, i32
  }
  func.func @transform_1(%arg0: i32) -> (i32, i32) {
    %c0_i32 = arith.constant 0 : i32
    %c0_i32_0 = arith.constant 0 : i32
    return %arg0, %c0_i32 : i32, i32
  }
  func.func @transform_2(%arg0: i32) -> (i32, i32) {
    %c0_i32 = arith.constant 0 : i32
    %c0_i32_0 = arith.constant 0 : i32
    return %arg0, %c0_i32 : i32, i32
  }
  func.func @transform_3(%arg0: i32) -> (i32, i32) {
    %c0_i32 = arith.constant 0 : i32
    %c0_i32_0 = arith.constant 0 : i32
    %c0_i32_1 = arith.constant 0 : i32
    return %c0_i32, %c0_i32_0 : i32, i32
  }
}

</mosaic_0001>

<bundles_post_ra>
// kernel: tpu_custom_call.1
= control target key start
LH: loop header
LB: loop body
LE: loop exit
PB: predicated region body
PF: predicated region fallthrough
CT: control target
= control target key end

     0   :  { %9 = vsyncpa [#allocation4], 0  ;;  %s200_s0 = inlined_call_operand.<no memory space> [shape: f32[1,1], index: 0, kind: input, shape index: {}]   ;;  %s201_s1 = inlined_call_operand.hbm [shape: f32[4,512], index: 1, kind: input, shape index: {}]   ;;  %s202_s2 = inlined_call_operand.hbm [shape: f32[4,512], index: 2, kind: input, shape index: {}]   ;;  %s203_s3 = inlined_call_operand.hbm [shape: f32[1,1], index: 3, kind: output, shape index: {}]  }
   0x1   :  { %10 = vsyncpa [#allocation7], 0 }
   0x2   :  { %11 = vsyncpa [#allocation5], 0  ;;  %s165_s12 = smov [#allocation3]   ;;  %s166_s14 = smov [#allocation6]  }
   0x3   :  { %s20_s13 = sshll.u32 %s165_s12, 4  ;;  %s30_s15 = sshll.u32 %s166_s14, 4  ;;  %s21_s13 = int_to_ptr.vmem [resolvable:$true] %s20_s13  ;;  %s31_s15 = int_to_ptr.vmem [resolvable:$true] %s30_s15 }
   0x4   :  { %s119_s16 = scalar_lea.vmem %s21_s13, 256  ;;  %p124_p1 = scmp.lt.s32.totalorder %s21_s13, %s21_s13 }
   0x5   :  { %p120_p0 = scmp.ne.s32.totalorder %s21_s13, %s119_s16  ;;  %p125_p2 = scmp.lt.s32.totalorder %s119_s16, %s119_s16 }
   0x7   :  { %p126_p3 = por %p125_p2, %p124_p1 }
   0x9   :  { %p127_p4 = pnand %p126_p3, %p120_p0 }
   0xb   :  { %130 = shalt.err (!%p127_p4)
}
   0xc   :  { %23 = dma.hbm_to_vmem [thread:$0]  %s201_s1, 256, %s21_s13, [#allocation4]  }
   0xd   :  { %s139_s19 = scalar_lea.vmem %s31_s15, 256  ;;  %p144_p6 = scmp.lt.s32.totalorder %s31_s15, %s31_s15 }
   0xe   :  { %p140_p5 = scmp.ne.s32.totalorder %s31_s15, %s139_s19  ;;  %p145_p7 = scmp.lt.s32.totalorder %s139_s19, %s139_s19 }
  0x10   :  { %p146_p8 = por %p145_p7, %p144_p6 }
  0x12   :  { %p147_p9 = pnand %p146_p8, %p140_p5 }
  0x14   :  { %150 = shalt.err (!%p147_p9)
}
  0x15   :  { %33 = dma.hbm_to_vmem [thread:$0]  %s202_s2, 256, %s31_s15, [#allocation7]  }
  0x16   :  { %159 = dma.done.wait [#allocation4], 256  }
  0x17   :  { %160 = vsyncadd [#allocation4], 4294967040 }
  0x18   :  { %161 = dma.done.wait [#allocation7], 256  }
  0x19   :  { %162 = vsyncadd [#allocation7], 4294967040  ;;  %v46_v0 = vld [vmem:[#allocation3] sm:$0xff]  ;;  %v47_v1 = vld [vmem:[#allocation3 + $0x8] sm:$0xff]  ;;  %vm61_vm0 = vcmask 1043456   ;;  %s167_s26 = smov [#allocation8]  }
  0x1a   :  { %v48_v2 = vld [vmem:[#allocation6] sm:$0xff]  ;;  %v49_v3 = vld [vmem:[#allocation6 + $0x8] sm:$0xff]  ;;  %s87_s23 = smul.f32 0.001, %s200_s0 }
  0x1b   :  { %v50_v4 = vsub.f32 %v46_v0, %v48_v2  ;;  %v51_v5 = vsub.f32 %v47_v1, %v49_v3 }
  0x1d   :  { %v53_v6 = vmul.f32 %v50_v4, %v50_v4  ;;  %v54_v7 = vmul.f32 %v51_v5, %v51_v5 }
  0x1f   :  { %v57_v8 = vcombine.high %v53_v6, %v53_v6  ;;  %v62_v9 = vsel %vm61_vm0, %v53_v6, 0.0  ;;  %v58_v10 = vcombine.high %v54_v7, %v54_v7  ;;  %v65_v12 = vsel %vm61_vm0, %v54_v7, 0.0 }
  0x21   :  { %v63_v11 = vsel %vm61_vm0, %v57_v8, 0.0  ;;  %v67_v14 = vsel %vm61_vm0, %v58_v10, 0.0 }
  0x22   :  { %v64_v13 = vadd.f32 %v63_v11, %v62_v9 }
  0x24   :  { %v66_v15 = vadd.f32 %v65_v12, %v64_v13 }
  0x26   :  { %v68_v16 = vadd.f32 %v67_v14, %v66_v15 }
  0x28   :  { %69 = vadd.xlane.f32.xlu0 %v68_v16 }
  0xb1   :  { %v70_v17 = vpop.xlane.xlu0 %69 }
  0xb2   :  { %v71_v18 = vrot.slane %v70_v17, 4 }
  0xb4   :  { %v72_v19 = vadd.f32 %v71_v18, %v70_v17 }
  0xb6   :  { %v73_v20 = vrot.slane %v72_v19, 2 }
  0xb8   :  { %v74_v21 = vadd.f32 %v73_v20, %v72_v19 }
  0xba   :  { %v75_v22 = vrot.slane %v74_v21, 1 }
  0xbc   :  { %v76_v23 = vadd.f32 %v75_v22, %v74_v21 }
  0xbe   :  { %105 = vpush %v76_v23 }
  0xef   :  { %s106_s1 = spop %105 }
  0xf0   :  { %s85_s24 = smul.f32 0.00048828125, %s106_s1 }
  0xf2   :  { %s88_s25 = sadd.f32 %s87_s23, %s85_s24 }
  0xf4   :  { %89 = sst [smem:[#allocation8]] %s88_s25 }
  0xf5   :  { %97 = dma.smem_to_hbm %s167_s26, 16, %s203_s3, [#allocation5]  }
  0xf6   :  { %163 = dma.done.wait [#allocation5], 16  }
  0xf7   :  { %164 = vsyncadd [#allocation5], 4294967280 }
  0xf8   :  { %101 = sfence }
  0xf9   :  { %102 = vsyncpa [#allocation4], 1 }
  0xfa   :  { %103 = vsyncpa [#allocation7], 1 }
  0xfb   :  { %104 = vsyncpa [#allocation5], 1 }

</bundles_post_ra>
